<compile_context>
chip_gen: v5e
topology: v5e:2x2
jax: 0.10.0
libtpu: 0.0.40
codegen_flags: <defaults>
</compile_context>

<pallas_src>
import jax
import jax.numpy as jnp
from jax.experimental import pallas as pl
from jax.experimental.pallas import tpu as pltpu

IN_F, H1, H2, OUT_F = 128, 64, 32, 4
OUT_PAD = 128  # lane-dense width for the final output path


def _round_up(x, m):
    return (x + m - 1) // m * m


# ---------------------------------------------------------------------------
# kernels
# ---------------------------------------------------------------------------
def _feat_kernel(x_ref, w_ref, o_ref):
    """o = x_tile @ w   (bf16 operands, f32 accumulate, bf16 store for the next matmul)."""
    o_ref[...] = jnp.dot(
        x_ref[...], w_ref[...], preferred_element_type=jnp.float32
    ).astype(jnp.bfloat16)


def _agg_feat_kernel(a_ref, xw_ref, b_ref, wn_ref, o_ref):
    """o = relu(a_tile @ xw_full + b) @ w_next.

    a_ref : (tm, n_pad)   bf16 row tile of the normalized adjacency
    xw_ref: (n_pad, f)    bf16 full-graph resident previous-layer X @ W
    b_ref : (1, f)        f32 bias of the current layer
    wn_ref: (f, f_next)   bf16 weight of the *next* layer (row-local, so fusable)
    """
    h = jnp.dot(a_ref[...], xw_ref[...], preferred_element_type=jnp.float32)
    h = jnp.maximum(h + b_ref[...], 0.0)  # bias / ReLU kept in f32 (v5e: no bf16 VPU)
    # TODO(synk): F.dropout is identity here (inference semantics); training-mode dropout
    # would use pltpu.prng_seed / pltpu.prng_random_bits between the ReLU and the matmul.
    o_ref[...] = jnp.dot(
        h.astype(jnp.bfloat16), wn_ref[...], preferred_element_type=jnp.float32
    ).astype(jnp.bfloat16)


def _agg_final_kernel(a_ref, xw_ref, b_ref, o_ref):
    """o = a_tile @ xw_full + b   (no activation), lane-dense f32 store."""
    o_ref[...] = (
        jnp.dot(a_ref[...], xw_ref[...], preferred_element_type=jnp.float32)
        + b_ref[...]
    )


# ---------------------------------------------------------------------------
# plain-JAX glue
# ---------------------------------------------------------------------------
def gcn_normalized_adjacency(edge_index, edge_weight, num_nodes):
    """Dense A_hat = D^{-1/2} (A + I) D^{-1/2}, A[target, source] = w (PyG gcn_norm)."""
    src, dst = edge_index[0], edge_index[1]
    if edge_weight is None:
        edge_weight = jnp.ones(edge_index.shape[1], dtype=jnp.float32)
    a = jnp.zeros((num_nodes, num_nodes), jnp.float32)
    a = a.at[dst, src].add(edge_weight)                # A[target, source] += w
    a = a + jnp.eye(num_nodes, dtype=jnp.float32)      # self loops (fill_value = 1)
    deg = a.sum(axis=1)
    dinv = jnp.where(deg > 0.0, jax.lax.rsqrt(deg), 0.0)
    return dinv[:, None] * a * dinv[None, :]


def init_params(key):
    """Glorot-uniform weights (as PyG GCNConv), zero biases."""
    ks = jax.random.split(key, 3)

    def glorot(k, fan_in, fan_out):
        lim = (6.0 / (fan_in + fan_out)) ** 0.5
        return jax.random.uniform(k, (fan_in, fan_out), jnp.float32, -lim, lim)

    w1 = glorot(ks[0], IN_F, H1)
    w2 = glorot(ks[1], H1, H2)
    w3 = glorot(ks[2], H2, OUT_F)
    b1 = jnp.zeros((1, H1), jnp.float32)
    b2 = jnp.zeros((1, H2), jnp.float32)
    b3 = jnp.zeros((1, OUT_F), jnp.float32)
    return (w1, b1, w2, b2, w3, b3)


# ---------------------------------------------------------------------------
# forward
# ---------------------------------------------------------------------------
def fbgcn_forward(x, edge_index, edge_weight, params):
    w1, b1, w2, b2, w3, b3 = params
    n = x.shape[0]

    a = gcn_normalized_adjacency(edge_index, edge_weight, n)

    # Row-tiling over A. Padded rows/cols of A are zero, so they never contaminate valid
    # output rows; padded output rows are sliced off at the end.
    n_pad = _round_up(n, 128)
    tm = 256 if (n_pad % 256 == 0 and 2 * 256 * n_pad * 2 <= (24 << 20)) else 128
    grid = (n_pad // tm,)

    # bf16 matmul operands; lane-dense padded layer-3 weights/bias (4 -> 128 lanes).
    a_bf = jnp.zeros((n_pad, n_pad), jnp.bfloat16).at[:n, :n].set(a.astype(jnp.bfloat16))
    x_bf = jnp.zeros((n_pad, IN_F), jnp.bfloat16).at[:n, :].set(x.astype(jnp.bfloat16))
    w1_bf = w1.astype(jnp.bfloat16)
    w2_bf = w2.astype(jnp.bfloat16)
    w3_bf = jnp.zeros((H2, OUT_PAD), jnp.bfloat16).at[:, :OUT_F].set(w3.astype(jnp.bfloat16))
    b3_p = jnp.zeros((1, OUT_PAD), jnp.float32).at[:, :OUT_F].set(b3)

    # Explicit scoped-VMEM budget: double-buffered A row-tile + resident XW / weights /
    # output tile, with slack; clamped under v7x's 64 MiB physical VMEM.
    a_tile_b = tm * n_pad * 2
    xw_res_b = n_pad * OUT_PAD * 2
    const_b = IN_F * OUT_PAD * 2 + OUT_PAD * 4
    out_tile_b = tm * OUT_PAD * 4
    vmem_est = 2 * (a_tile_b + xw_res_b + const_b + out_tile_b) + (2 << 20)
    cparams = pltpu.CompilerParams(
        dimension_semantics=("parallel",),
        vmem_limit_bytes=int(max(16 << 20, min(vmem_est, 60 << 20))),
    )

    def row_spec(f):
        return pl.BlockSpec((tm, f), lambda i: (i, 0))

    def full_spec(r, c):
        return pl.BlockSpec((r, c), lambda i: (0, 0))

    # 1) XW1 = X @ W1
    xw1 = pl.pallas_call(
        _feat_kernel,
        out_shape=jax.ShapeDtypeStruct((n_pad, H1), jnp.bfloat16),
        grid=grid,
        in_specs=[row_spec(IN_F), full_spec(IN_F, H1)],
        out_specs=row_spec(H1),
        compiler_params=cparams,
    )(x_bf, w1_bf)

    # 2) XW2 = relu(A @ XW1 + b1) @ W2
    xw2 = pl.pallas_call(
        _agg_feat_kernel,
        out_shape=jax.ShapeDtypeStruct((n_pad, H2), jnp.bfloat16),
        grid=grid,
        in_specs=[row_spec(n_pad), full_spec(n_pad, H1), full_spec(1, H1), full_spec(H1, H2)],
        out_specs=row_spec(H2),
        compiler_params=cparams,
    )(a_bf, xw1, b1, w2_bf)

    # 3) XW3p = relu(A @ XW2 + b2) @ W3_padded
    xw3 = pl.pallas_call(
        _agg_feat_kernel,
        out_shape=jax.ShapeDtypeStruct((n_pad, OUT_PAD), jnp.bfloat16),
        grid=grid,
        in_specs=[row_spec(n_pad), full_spec(n_pad, H2), full_spec(1, H2), full_spec(H2, OUT_PAD)],
        out_specs=row_spec(OUT_PAD),
        compiler_params=cparams,
    )(a_bf, xw2, b2, w3_bf)

    # 4) OUT = A @ XW3p + b3_padded   (lane-dense f32 store; valid slice taken below)
    out = pl.pallas_call(
        _agg_final_kernel,
        out_shape=jax.ShapeDtypeStruct((n_pad, OUT_PAD), jnp.float32),
        grid=grid,
        in_specs=[row_spec(n_pad), full_spec(n_pad, OUT_PAD), full_spec(1, OUT_PAD)],
        out_specs=row_spec(OUT_PAD),
        compiler_params=cparams,
    )(a_bf, xw3, b3_p)

    return out[:n, :OUT_F]


if __name__ == "__main__":
    key = jax.random.PRNGKey(0)
    kx, ke, kw, kp = jax.random.split(key, 4)

    N, E = 64, 256
    x = jax.random.normal(kx, (N, IN_F), dtype=jnp.float32)
    edge_index = jax.random.randint(ke, (2, E), 0, N, dtype=jnp.int32)
    edge_weight = jax.random.uniform(kw, (E,), jnp.float32, 0.5, 1.5)
    params = init_params(kp)

    out = jax.jit(fbgcn_forward)(x, edge_index, edge_weight, params)
    jax.block_until_ready(out)

    # pure-JAX f32 reference (same math); bf16 MXU operands -> loosened tolerance
    a = gcn_normalized_adjacency(edge_index, edge_weight, N)
    w1, b1, w2, b2, w3, b3 = params
    h = jnp.maximum(a @ (x @ w1) + b1, 0.0)
    h = jnp.maximum(a @ (h @ w2) + b2, 0.0)
    ref = a @ (h @ w3) + b3

    assert out.shape == (N, OUT_F)
    max_err = float(jnp.max(jnp.abs(out - ref)))
    assert jnp.allclose(out, ref, atol=1e-1, rtol=1e-1), max_err

    print("KERNEL_OK")
</pallas_src>

<mosaic_0001>
module attributes {stable_mosaic.version = 11 : i64} {
  func.func @_feat_kernel(%arg0: i32, %arg1: memref<128x128xbf16, #tpu.memory_space<vmem>>, %arg2: memref<128x64xbf16, #tpu.memory_space<vmem>>, %arg3: memref<128x64xbf16, #tpu.memory_space<vmem>>) attributes {dimension_semantics = [#tpu.dimension_semantics<parallel>], iteration_bounds = array<i64: 1>, scalar_prefetch = 0 : i64, scratch_operands = 0 : i64, tpu.core_type = #tpu.core_type<tc>, window_params = [{transform_indices = @transform_0, window_bounds = array<i64: 128, 128>}, {pipeline_mode = #tpu.pipeline_mode<synchronous>, transform_indices = @transform_1, window_bounds = array<i64: 128, 64>}, {transform_indices = @transform_2, window_bounds = array<i64: 128, 64>}]} {
    %c0 = arith.constant 0 : index
    %c0_0 = arith.constant 0 : index
    %0 = vector.load %arg1[%c0, %c0_0] : memref<128x128xbf16, #tpu.memory_space<vmem>>, vector<128x128xbf16>
    %c0_1 = arith.constant 0 : index
    %c0_2 = arith.constant 0 : index
    %1 = vector.load %arg2[%c0_1, %c0_2] : memref<128x64xbf16, #tpu.memory_space<vmem>>, vector<128x64xbf16>
    %cst = arith.constant dense<0.000000e+00> : vector<128x64xf32>
    %2 = tpu.matmul %0, %1, %cst {dimension_numbers = #tpu.dot_dimension_numbers<[1], [0], [0], [1], [0, 0, 1, 1], [], []>} : vector<128x128xbf16>, vector<128x64xbf16>, vector<128x64xf32> -> vector<128x64xf32>
    %3 = arith.truncf %2 : vector<128x64xf32> to vector<128x64xbf16>
    %c0_3 = arith.constant 0 : index
    %c0_4 = arith.constant 0 : index
    %4 = vector.load %arg3[%c0_3, %c0_4] : memref<128x64xbf16, #tpu.memory_space<vmem>>, vector<128x64xbf16>
    tpu.vector_store %arg3[%c0_3, %c0_4], %3 {strides = array<i32>} : memref<128x64xbf16, #tpu.memory_space<vmem>>, vector<128x64xbf16>,
    return
  }
  func.func @transform_0(%arg0: i32) -> (i32, i32) {
    %c0_i32 = arith.constant 0 : i32
    %c0_i32_0 = arith.constant 0 : i32
    return %arg0, %c0_i32 : i32, i32
  }
  func.func @transform_1(%arg0: i32) -> (i32, i32) {
    %c0_i32 = arith.constant 0 : i32
    %c0_i32_0 = arith.constant 0 : i32
    %c0_i32_1 = arith.constant 0 : i32
    return %c0_i32, %c0_i32_0 : i32, i32
  }
  func.func @transform_2(%arg0: i32) -> (i32, i32) {
    %c0_i32 = arith.constant 0 : i32
    %c0_i32_0 = arith.constant 0 : i32
    return %arg0, %c0_i32 : i32, i32
  }
}

module attributes {stable_mosaic.version = 11 : i64} {
  func.func @_agg_feat_kernel(%arg0: i32, %arg1: memref<128x128xbf16, #tpu.memory_space<vmem>>, %arg2: memref<128x64xbf16, #tpu.memory_space<vmem>>, %arg3: memref<1x64xf32, #tpu.memory_space<vmem>>, %arg4: memref<64x32xbf16, #tpu.memory_space<vmem>>, %arg5: memref<128x32xbf16, #tpu.memory_space<vmem>>) attributes {dimension_semantics = [#tpu.dimension_semantics<parallel>], iteration_bounds = array<i64: 1>, scalar_prefetch = 0 : i64, scratch_operands = 0 : i64, tpu.core_type = #tpu.core_type<tc>, window_params = [{transform_indices = @transform_0, window_bounds = array<i64: 128, 128>}, {pipeline_mode = #tpu.pipeline_mode<synchronous>, transform_indices = @transform_1, window_bounds = array<i64: 128, 64>}, {pipeline_mode = #tpu.pipeline_mode<synchronous>, transform_indices = @transform_2, window_bounds = array<i64: 1, 64>}, {pipeline_mode = #tpu.pipeline_mode<synchronous>, transform_indices = @transform_3, window_bounds = array<i64: 64, 32>}, {transform_indices = @transform_4, window_bounds = array<i64: 128, 32>}]} {
    %c0 = arith.constant 0 : index
    %c0_0 = arith.constant 0 : index
    %0 = vector.load %arg1[%c0, %c0_0] : memref<128x128xbf16, #tpu.memory_space<vmem>>, vector<128x128xbf16>
    %c0_1 = arith.constant 0 : index
    %c0_2 = arith.constant 0 : index
    %1 = vector.load %arg2[%c0_1, %c0_2] : memref<128x64xbf16, #tpu.memory_space<vmem>>, vector<128x64xbf16>
    %cst = arith.constant dense<0.000000e+00> : vector<128x64xf32>
    %2 = tpu.matmul %0, %1, %cst {dimension_numbers = #tpu.dot_dimension_numbers<[1], [0], [0], [1], [0, 0, 1, 1], [], []>} : vector<128x128xbf16>, vector<128x64xbf16>, vector<128x64xf32> -> vector<128x64xf32>
    %c0_3 = arith.constant 0 : index
    %c0_4 = arith.constant 0 : index
    %3 = vector.load %arg3[%c0_3, %c0_4] : memref<1x64xf32, #tpu.memory_space<vmem>>, vector<1x64xf32>
    %4 = vector.broadcast %3 : vector<1x64xf32> to vector<128x64xf32>
    %5 = arith.addf %2, %4 : vector<128x64xf32>
    %cst_5 = arith.constant 0.000000e+00 : f32
    %6 = vector.broadcast %cst_5 : f32 to vector<128x64xf32>
    %7 = arith.maximumf %5, %6 : vector<128x64xf32>
    %8 = arith.truncf %7 : vector<128x64xf32> to vector<128x64xbf16>
    %c0_6 = arith.constant 0 : index
    %c0_7 = arith.constant 0 : index
    %9 = vector.load %arg4[%c0_6, %c0_7] : memref<64x32xbf16, #tpu.memory_space<vmem>>, vector<64x32xbf16>
    %cst_8 = arith.constant dense<0.000000e+00> : vector<128x32xf32>
    %10 = tpu.matmul %8, %9, %cst_8 {dimension_numbers = #tpu.dot_dimension_numbers<[1], [0], [0], [1], [0, 0, 1, 1], [], []>} : vector<128x64xbf16>, vector<64x32xbf16>, vector<128x32xf32> -> vector<128x32xf32>
    %11 = arith.truncf %10 : vector<128x32xf32> to vector<128x32xbf16>
    %c0_9 = arith.constant 0 : index
    %c0_10 = arith.constant 0 : index
    %12 = vector.load %arg5[%c0_9, %c0_10] : memref<128x32xbf16, #tpu.memory_space<vmem>>, vector<128x32xbf16>
    tpu.vector_store %arg5[%c0_9, %c0_10], %11 {strides = array<i32>} : memref<128x32xbf16, #tpu.memory_space<vmem>>, vector<128x32xbf16>,
    return
  }
  func.func @transform_0(%arg0: i32) -> (i32, i32) {
    %c0_i32 = arith.constant 0 : i32
    %c0_i32_0 = arith.constant 0 : i32
    return %arg0, %c0_i32 : i32, i32
  }
  func.func @transform_1(%arg0: i32) -> (i32, i32) {
    %c0_i32 = arith.constant 0 : i32
    %c0_i32_0 = arith.constant 0 : i32
    %c0_i32_1 = arith.constant 0 : i32
    return %c0_i32, %c0_i32_0 : i32, i32
  }
  func.func @transform_2(%arg0: i32) -> (i32, i32) {
    %c0_i32 = arith.constant 0 : i32
    %c0_i32_0 = arith.constant 0 : i32
    %c0_i32_1 = arith.constant 0 : i32
    return %c0_i32, %c0_i32_0 : i32, i32
  }
  func.func @transform_3(%arg0: i32) -> (i32, i32) {
    %c0_i32 = arith.constant 0 : i32
    %c0_i32_0 = arith.constant 0 : i32
    %c0_i32_1 = arith.constant 0 : i32
    return %c0_i32, %c0_i32_0 : i32, i32
  }
  func.func @transform_4(%arg0: i32) -> (i32, i32) {
    %c0_i32 = arith.constant 0 : i32
    %c0_i32_0 = arith.constant 0 : i32
    return %arg0, %c0_i32 : i32, i32
  }
}

module attributes {stable_mosaic.version = 11 : i64} {
  func.func @_agg_feat_kernel(%arg0: i32, %arg1: memref<128x128xbf16, #tpu.memory_space<vmem>>, %arg2: memref<128x32xbf16, #tpu.memory_space<vmem>>, %arg3: memref<1x32xf32, #tpu.memory_space<vmem>>, %arg4: memref<32x128xbf16, #tpu.memory_space<vmem>>, %arg5: memref<128x128xbf16, #tpu.memory_space<vmem>>) attributes {dimension_semantics = [#tpu.dimension_semantics<parallel>], iteration_bounds = array<i64: 1>, scalar_prefetch = 0 : i64, scratch_operands = 0 : i64, tpu.core_type = #tpu.core_type<tc>, window_params = [{transform_indices = @transform_0, window_bounds = array<i64: 128, 128>}, {pipeline_mode = #tpu.pipeline_mode<synchronous>, transform_indices = @transform_1, window_bounds = array<i64: 128, 32>}, {pipeline_mode = #tpu.pipeline_mode<synchronous>, transform_indices = @transform_2, window_bounds = array<i64: 1, 32>}, {pipeline_mode = #tpu.pipeline_mode<synchronous>, transform_indices = @transform_3, window_bounds = array<i64: 32, 128>}, {transform_indices = @transform_4, window_bounds = array<i64: 128, 128>}]} {
    %c0 = arith.constant 0 : index
    %c0_0 = arith.constant 0 : index
    %0 = vector.load %arg1[%c0, %c0_0] : memref<128x128xbf16, #tpu.memory_space<vmem>>, vector<128x128xbf16>
    %c0_1 = arith.constant 0 : index
    %c0_2 = arith.constant 0 : index
    %1 = vector.load %arg2[%c0_1, %c0_2] : memref<128x32xbf16, #tpu.memory_space<vmem>>, vector<128x32xbf16>
    %cst = arith.constant dense<0.000000e+00> : vector<128x32xf32>
    %2 = tpu.matmul %0, %1, %cst {dimension_numbers = #tpu.dot_dimension_numbers<[1], [0], [0], [1], [0, 0, 1, 1], [], []>} : vector<128x128xbf16>, vector<128x32xbf16>, vector<128x32xf32> -> vector<128x32xf32>
    %c0_3 = arith.constant 0 : index
    %c0_4 = arith.constant 0 : index
    %3 = vector.load %arg3[%c0_3, %c0_4] : memref<1x32xf32, #tpu.memory_space<vmem>>, vector<1x32xf32>
    %4 = vector.broadcast %3 : vector<1x32xf32> to vector<128x32xf32>
    %5 = arith.addf %2, %4 : vector<128x32xf32>
    %cst_5 = arith.constant 0.000000e+00 : f32
    %6 = vector.broadcast %cst_5 : f32 to vector<128x32xf32>
    %7 = arith.maximumf %5, %6 : vector<128x32xf32>
    %8 = arith.truncf %7 : vector<128x32xf32> to vector<128x32xbf16>
    %c0_6 = arith.constant 0 : index
    %c0_7 = arith.constant 0 : index
    %9 = vector.load %arg4[%c0_6, %c0_7] : memref<32x128xbf16, #tpu.memory_space<vmem>>, vector<32x128xbf16>
    %cst_8 = arith.constant dense<0.000000e+00> : vector<128x128xf32>
    %10 = tpu.matmul %8, %9, %cst_8 {dimension_numbers = #tpu.dot_dimension_numbers<[1], [0], [0], [1], [0, 0, 1, 1], [], []>} : vector<128x32xbf16>, vector<32x128xbf16>, vector<128x128xf32> -> vector<128x128xf32>
    %11 = arith.truncf %10 : vector<128x128xf32> to vector<128x128xbf16>
    %c0_9 = arith.constant 0 : index
    %c0_10 = arith.constant 0 : index
    %12 = vector.load %arg5[%c0_9, %c0_10] : memref<128x128xbf16, #tpu.memory_space<vmem>>, vector<128x128xbf16>
    tpu.vector_store %arg5[%c0_9, %c0_10], %11 {strides = array<i32>} : memref<128x128xbf16, #tpu.memory_space<vmem>>, vector<128x128xbf16>,
    return
  }
  func.func @transform_0(%arg0: i32) -> (i32, i32) {
    %c0_i32 = arith.constant 0 : i32
    %c0_i32_0 = arith.constant 0 : i32
    return %arg0, %c0_i32 : i32, i32
  }
  func.func @transform_1(%arg0: i32) -> (i32, i32) {
    %c0_i32 = arith.constant 0 : i32
    %c0_i32_0 = arith.constant 0 : i32
    %c0_i32_1 = arith.constant 0 : i32
    return %c0_i32, %c0_i32_0 : i32, i32
  }
  func.func @transform_2(%arg0: i32) -> (i32, i32) {
    %c0_i32 = arith.constant 0 : i32
    %c0_i32_0 = arith.constant 0 : i32
    %c0_i32_1 = arith.constant 0 : i32
    return %c0_i32, %c0_i32_0 : i32, i32
  }
  func.func @transform_3(%arg0: i32) -> (i32, i32) {
    %c0_i32 = arith.constant 0 : i32
    %c0_i32_0 = arith.constant 0 : i32
    %c0_i32_1 = arith.constant 0 : i32
    return %c0_i32, %c0_i32_0 : i32, i32
  }
  func.func @transform_4(%arg0: i32) -> (i32, i32) {
    %c0_i32 = arith.constant 0 : i32
    %c0_i32_0 = arith.constant 0 : i32
    return %arg0, %c0_i32 : i32, i32
  }
}

module attributes {stable_mosaic.version = 11 : i64} {
  func.func @_agg_final_kernel(%arg0: i32, %arg1: memref<128x128xbf16, #tpu.memory_space<vmem>>, %arg2: memref<128x128xbf16, #tpu.memory_space<vmem>>, %arg3: memref<1x128xf32, #tpu.memory_space<vmem>>, %arg4: memref<128x128xf32, #tpu.memory_space<vmem>>) attributes {dimension_semantics = [#tpu.dimension_semantics<parallel>], iteration_bounds = array<i64: 1>, scalar_prefetch = 0 : i64, scratch_operands = 0 : i64, tpu.core_type = #tpu.core_type<tc>, window_params = [{transform_indices = @transform_0, window_bounds = array<i64: 128, 128>}, {pipeline_mode = #tpu.pipeline_mode<synchronous>, transform_indices = @transform_1, window_bounds = array<i64: 128, 128>}, {pipeline_mode = #tpu.pipeline_mode<synchronous>, transform_indices = @transform_2, window_bounds = array<i64: 1, 128>}, {transform_indices = @transform_3, window_bounds = array<i64: 128, 128>}]} {
    %c0 = arith.constant 0 : index
    %c0_0 = arith.constant 0 : index
    %0 = vector.load %arg1[%c0, %c0_0] : memref<128x128xbf16, #tpu.memory_space<vmem>>, vector<128x128xbf16>
    %c0_1 = arith.constant 0 : index
    %c0_2 = arith.constant 0 : index
    %1 = vector.load %arg2[%c0_1, %c0_2] : memref<128x128xbf16, #tpu.memory_space<vmem>>, vector<128x128xbf16>
    %cst = arith.constant dense<0.000000e+00> : vector<128x128xf32>
    %2 = tpu.matmul %0, %1, %cst {dimension_numbers = #tpu.dot_dimension_numbers<[1], [0], [0], [1], [0, 0, 1, 1], [], []>} : vector<128x128xbf16>, vector<128x128xbf16>, vector<128x128xf32> -> vector<128x128xf32>
    %c0_3 = arith.constant 0 : index
    %c0_4 = arith.constant 0 : index
    %3 = vector.load %arg3[%c0_3, %c0_4] : memref<1x128xf32, #tpu.memory_space<vmem>>, vector<1x128xf32>
    %4 = vector.broadcast %3 : vector<1x128xf32> to vector<128x128xf32>
    %5 = arith.addf %2, %4 : vector<128x128xf32>
    %c0_5 = arith.constant 0 : index
    %c0_6 = arith.constant 0 : index
    %6 = vector.load %arg4[%c0_5, %c0_6] : memref<128x128xf32, #tpu.memory_space<vmem>>, vector<128x128xf32>
    tpu.vector_store %arg4[%c0_5, %c0_6], %5 {strides = array<i32>} : memref<128x128xf32, #tpu.memory_space<vmem>>, vector<128x128xf32>,
    return
  }
  func.func @transform_0(%arg0: i32) -> (i32, i32) {
    %c0_i32 = arith.constant 0 : i32
    %c0_i32_0 = arith.constant 0 : i32
    return %arg0, %c0_i32 : i32, i32
  }
  func.func @transform_1(%arg0: i32) -> (i32, i32) {
    %c0_i32 = arith.constant 0 : i32
    %c0_i32_0 = arith.constant 0 : i32
    %c0_i32_1 = arith.constant 0 : i32
    return %c0_i32, %c0_i32_0 : i32, i32
  }
  func.func @transform_2(%arg0: i32) -> (i32, i32) {
    %c0_i32 = arith.constant 0 : i32
    %c0_i32_0 = arith.constant 0 : i32
    %c0_i32_1 = arith.constant 0 : i32
    return %c0_i32, %c0_i32_0 : i32, i32
  }
  func.func @transform_3(%arg0: i32) -> (i32, i32) {
    %c0_i32 = arith.constant 0 : i32
    %c0_i32_0 = arith.constant 0 : i32
    return %arg0, %c0_i32 : i32, i32
  }
}

</mosaic_0001>

<bundles_post_ra>
// kernel: fbgcn_forward.4
= control target key start
LH: loop header
LB: loop body
LE: loop exit
PB: predicated region body
PF: predicated region fallthrough
CT: control target
= control target key end

     0   :  { %vm204_vm0 = vcmask 519168   ;;  %s456_s1 = inlined_call_operand.vmem [shape: bf16[128,64], index: 1, kind: input, shape index: {}]   ;;  %s457_s0 = inlined_call_operand.vmem [shape: bf16[128,128], index: 0, kind: input, shape index: {}]   ;;  %s458_s2 = inlined_call_operand.vmem [shape: bf16[128,64], index: 2, kind: output, shape index: {}]  }
   0x1   :  { %v304_v0 = vld [vmem:[%s456_s1 + $0x38] sm:$0xff]  ;;  %v303_v1 = vld [vmem:[%s456_s1 + $0x30] sm:$0xff]  ;;  %v302_v2 = vld [vmem:[%s456_s1 + $0x28] sm:$0xff] }
   0x2   :  { %139 = vmatpush.bf16.msra.mxu0 %v304_v0  ;;  %305 = vmatpush.bf16.msra.mxu1 %v304_v0  ;;  %v301_v3 = vld [vmem:[%s456_s1 + $0x20] sm:$0xff]  ;;  %v300_v4 = vld [vmem:[%s456_s1 + $0x18] sm:$0xff]  ;;  %v299_v5 = vld [vmem:[%s456_s1 + $0x10] sm:$0xff] }
   0x3   :  { %306 = vmatpush.bf16.msra.mxu2 %v304_v0  ;;  %307 = vmatpush.bf16.msra.mxu3 %v304_v0  ;;  %v298_v6 = vld [vmem:[%s456_s1 + $0x8] sm:$0xff]  ;;  %v297_v7 = vld [vmem:[%s456_s1] sm:$0xff]  ;;  %v291_v9 = vld [vmem:[%s457_s0 + $0x10] sm:$0xff] }
   0x4   :  { %v289_v8 = vld [vmem:[%s457_s0] sm:$0xff]  ;;  %v295_v11 = vld [vmem:[%s457_s0 + $0x30] sm:$0xff]  ;;  %v290_v12 = vld [vmem:[%s457_s0 + $0x8] sm:$0xff] }
   0x5   :  { %v293_v10 = vld [vmem:[%s457_s0 + $0x20] sm:$0xff]  ;;  %v292_v13 = vld [vmem:[%s457_s0 + $0x18] sm:$0xff]  ;;  %v294_v14 = vld [vmem:[%s457_s0 + $0x28] sm:$0xff] }
   0x6   :  { %140 = vmatpush.bf16.msra.mxu0 %v303_v1  ;;  %308 = vmatpush.bf16.msra.mxu1 %v303_v1  ;;  %v296_v15 = vld [vmem:[%s457_s0 + $0x38] sm:$0xff] }
   0x7   :  { %309 = vmatpush.bf16.msra.mxu2 %v303_v1  ;;  %310 = vmatpush.bf16.msra.mxu3 %v303_v1 }
   0xa   :  { %141 = vmatpush.bf16.msra.mxu0 %v302_v2  ;;  %311 = vmatpush.bf16.msra.mxu1 %v302_v2 }
   0xb   :  { %312 = vmatpush.bf16.msra.mxu2 %v302_v2  ;;  %313 = vmatpush.bf16.msra.mxu3 %v302_v2 }
   0xe   :  { %142 = vmatpush.bf16.msra.mxu0 %v301_v3  ;;  %314 = vmatpush.bf16.msra.mxu1 %v301_v3 }
   0xf   :  { %315 = vmatpush.bf16.msra.mxu2 %v301_v3  ;;  %316 = vmatpush.bf16.msra.mxu3 %v301_v3 }
  0x12   :  { %143 = vmatpush.bf16.msra.mxu0 %v300_v4  ;;  %317 = vmatpush.bf16.msra.mxu1 %v300_v4 }
  0x13   :  { %318 = vmatpush.bf16.msra.mxu2 %v300_v4  ;;  %319 = vmatpush.bf16.msra.mxu3 %v300_v4 }
  0x16   :  { %144 = vmatpush.bf16.msra.mxu0 %v299_v5  ;;  %320 = vmatpush.bf16.msra.mxu1 %v299_v5 }
  0x17   :  { %321 = vmatpush.bf16.msra.mxu2 %v299_v5  ;;  %322 = vmatpush.bf16.msra.mxu3 %v299_v5 }
  0x1a   :  { %145 = vmatpush.bf16.msra.mxu0 %v298_v6  ;;  %323 = vmatpush.bf16.msra.mxu1 %v298_v6 }
  0x1b   :  { %324 = vmatpush.bf16.msra.mxu2 %v298_v6  ;;  %325 = vmatpush.bf16.msra.mxu3 %v298_v6 }
  0x1e   :  { %146 = vmatpush.bf16.msra.mxu0 %v297_v7  ;;  %326 = vmatpush.bf16.msra.mxu1 %v297_v7 }
  0x1f   :  { %327 = vmatpush.bf16.msra.mxu2 %v297_v7  ;;  %328 = vmatpush.bf16.msra.mxu3 %v297_v7 }
  0x21   :  { %147 = vmatmul.bf16.vlgmr.msra.gmra.mxu0 %v289_v8  ;;  %157 = vmatmul.bf16.vlgmr.msra.gmra.mxu1 %v291_v9 }
  0x22   :  { %167 = vmatmul.bf16.vlgmr.msra.gmra.mxu2 %v293_v10  ;;  %177 = vmatmul.bf16.vlgmr.msra.gmra.mxu3 %v295_v11 }
  0x31   :  { %152 = vmatmul.bf16.gmra.mxu0 %v290_v12  ;;  %162 = vmatmul.bf16.gmra.mxu1 %v292_v13 }
  0x32   :  { %172 = vmatmul.bf16.gmra.mxu2 %v294_v14  ;;  %182 = vmatmul.bf16.gmra.mxu3 %v296_v15 }
  0x9e   :  { %v148_v16 = vpop.f32.mrf.mxu0  ;;  %v158_v17 = vpop.f32.mrf.mxu1 }
  0x9f   :  { %v188_v18 = vpack.c.bf16 %v148_v16, %v148_v16  ;;  %v192_v19 = vpack.c.bf16 %v158_v17, %v158_v17 }
  0xa1   :  { %205 = vst.msk [vmem:[%s458_s2] sm:$0xf] %vm204_vm0, %v188_v18 }
  0xa2   :  { %209 = vst.msk [vmem:[%s458_s2 + $0x10] sm:$0xf] %vm204_vm0, %v192_v19 }
  0xa5   :  { %v168_v20 = vpop.f32.mrf.mxu2  ;;  %v178_v21 = vpop.f32.mrf.mxu3 }
  0xa6   :  { %v196_v22 = vpack.c.bf16 %v168_v20, %v168_v20  ;;  %v200_v23 = vpack.c.bf16 %v178_v21, %v178_v21  ;;  %v150_v24 = vpop.f32.mrf.mxu0  ;;  %v160_v25 = vpop.f32.mrf.mxu1 }
  0xa7   :  { %v189_v26 = vpack.c.bf16 %v150_v24, %v150_v24  ;;  %v193_v27 = vpack.c.bf16 %v160_v25, %v160_v25 }
  0xa8   :  { %213 = vst.msk [vmem:[%s458_s2 + $0x20] sm:$0xf] %vm204_vm0, %v196_v22 }
  0xa9   :  { %217 = vst.msk [vmem:[%s458_s2 + $0x30] sm:$0xf] %vm204_vm0, %v200_v23 }
  0xaa   :  { %206 = vst.msk [vmem:[%s458_s2 + $0x4] sm:$0xf] %vm204_vm0, %v189_v26 }
  0xab   :  { %210 = vst.msk [vmem:[%s458_s2 + $0x14] sm:$0xf] %vm204_vm0, %v193_v27 }
  0xad   :  { %v170_v28 = vpop.f32.mrf.mxu2  ;;  %v180_v29 = vpop.f32.mrf.mxu3 }
  0xae   :  { %v197_v30 = vpack.c.bf16 %v170_v28, %v170_v28  ;;  %v201_v31 = vpack.c.bf16 %v180_v29, %v180_v29  ;;  %v153_v32 = vpop.f32.mrf.mxu0  ;;  %v163_v33 = vpop.f32.mrf.mxu1 }
  0xaf   :  { %v190_v34 = vpack.c.bf16 %v153_v32, %v153_v32  ;;  %v194_v35 = vpack.c.bf16 %v163_v33, %v163_v33 }
  0xb0   :  { %214 = vst.msk [vmem:[%s458_s2 + $0x24] sm:$0xf] %vm204_vm0, %v197_v30 }
  0xb1   :  { %218 = vst.msk [vmem:[%s458_s2 + $0x34] sm:$0xf] %vm204_vm0, %v201_v31 }
  0xb2   :  { %207 = vst.msk [vmem:[%s458_s2 + $0x8] sm:$0xf] %vm204_vm0, %v190_v34 }
  0xb3   :  { %211 = vst.msk [vmem:[%s458_s2 + $0x18] sm:$0xf] %vm204_vm0, %v194_v35 }
  0xb5   :  { %v173_v36 = vpop.f32.mrf.mxu2  ;;  %v183_v37 = vpop.f32.mrf.mxu3 }
  0xb6   :  { %v198_v38 = vpack.c.bf16 %v173_v36, %v173_v36  ;;  %v202_v39 = vpack.c.bf16 %v183_v37, %v183_v37  ;;  %v155_v40 = vpop.f32.mrf.mxu0  ;;  %v165_v41 = vpop.f32.mrf.mxu1 }
  0xb7   :  { %v191_v42 = vpack.c.bf16 %v155_v40, %v155_v40  ;;  %v195_v43 = vpack.c.bf16 %v165_v41, %v165_v41 }
  0xb8   :  { %215 = vst.msk [vmem:[%s458_s2 + $0x28] sm:$0xf] %vm204_vm0, %v198_v38 }
  0xb9   :  { %219 = vst.msk [vmem:[%s458_s2 + $0x38] sm:$0xf] %vm204_vm0, %v202_v39 }
  0xba   :  { %208 = vst.msk [vmem:[%s458_s2 + $0xc] sm:$0xf] %vm204_vm0, %v191_v42 }
  0xbb   :  { %212 = vst.msk [vmem:[%s458_s2 + $0x1c] sm:$0xf] %vm204_vm0, %v195_v43 }
  0xbd   :  { %v175_v44 = vpop.f32.mrf.mxu2  ;;  %v185_v45 = vpop.f32.mrf.mxu3 }
  0xbe   :  { %v199_v46 = vpack.c.bf16 %v175_v44, %v175_v44  ;;  %v203_v47 = vpack.c.bf16 %v185_v45, %v185_v45 }
  0xc0   :  { %216 = vst.msk [vmem:[%s458_s2 + $0x2c] sm:$0xf] %vm204_vm0, %v199_v46 }
  0xc1   :  { %220 = vst.msk [vmem:[%s458_s2 + $0x3c] sm:$0xf] %vm204_vm0, %v203_v47 }

// kernel: fbgcn_forward.5
= control target key start
LH: loop header
LB: loop body
LE: loop exit
PB: predicated region body
PF: predicated region fallthrough
CT: control target
= control target key end

     0   :  { %vm255_vm0 = vcmask 523264   ;;  %vm345_vm1 = vcmask 257024   ;;  %s647_s1 = inlined_call_operand.vmem [shape: bf16[128,64], index: 1, kind: input, shape index: {}]   ;;  %s648_s2 = inlined_call_operand.vmem [shape: f32[1,64], index: 2, kind: input, shape index: {}]   ;;  %s649_s0 = inlined_call_operand.vmem [shape: bf16[128,128], index: 0, kind: input, shape index: {}]   ;;  %s650_s3 = inlined_call_operand.vmem [shape: bf16[64,32], index: 3, kind: input, shape index: {}]   ;;  %s651_s4 = inlined_call_operand.vmem [shape: bf16[128,32], index: 4, kind: output, shape index: {}]  }
   0x1   :  { %v469_v0 = vld [vmem:[%s647_s1 + $0x38] sm:$0xff]  ;;  %v468_v1 = vld [vmem:[%s647_s1 + $0x30] sm:$0xff]  ;;  %v467_v2 = vld [vmem:[%s647_s1 + $0x28] sm:$0xff] }
   0x2   :  { %150 = vmatpush.bf16.msra.mxu0 %v469_v0  ;;  %474 = vmatpush.bf16.msra.mxu2 %v469_v0  ;;  %v466_v3 = vld [vmem:[%s647_s1 + $0x20] sm:$0xff]  ;;  %v465_v4 = vld [vmem:[%s647_s1 + $0x18] sm:$0xff]  ;;  %v464_v5 = vld [vmem:[%s647_s1 + $0x10] sm:$0xff] }
   0x3   :  { %v463_v6 = vld [vmem:[%s647_s1 + $0x8] sm:$0xff]  ;;  %v462_v7 = vld [vmem:[%s647_s1] sm:$0xff]  ;;  %v456_v12 = vld [vmem:[%s649_s0 + $0x10] sm:$0xff] }
   0x4   :  { %v454_v8 = vld [vmem:[%s649_s0] sm:$0xff]  ;;  %v455_v10 = vld [vmem:[%s649_s0 + $0x8] sm:$0xff]  ;;  %v460_v13 = vld [vmem:[%s649_s0 + $0x30] sm:$0xff] }
   0x5   :  { %v458_v9 = vld [vmem:[%s649_s0 + $0x20] sm:$0xff]  ;;  %v459_v11 = vld [vmem:[%s649_s0 + $0x28] sm:$0xff]  ;;  %v457_v14 = vld [vmem:[%s649_s0 + $0x18] sm:$0xff] }
   0x6   :  { %151 = vmatpush.bf16.msra.mxu0 %v468_v1  ;;  %475 = vmatpush.bf16.msra.mxu2 %v468_v1  ;;  %v461_v15 = vld [vmem:[%s649_s0 + $0x38] sm:$0xff]  ;;  %v472_v17 = vld [vmem:[%s650_s3 + $0x10] sm:$0xff]  ;;  %v471_v18 = vld [vmem:[%s650_s3 + $0x8] sm:$0xff] }
   0x7   :  { %v473_v16 = vld [vmem:[%s650_s3 + $0x18] sm:$0xff]  ;;  %v470_v19 = vld [vmem:[%s650_s3] sm:$0xff] }
   0x8   :  { %284 = vmatpush.bf16.msra.mxu1 %v473_v16  ;;  %482 = vmatpush.bf16.msra.mxu3 %v473_v16  ;;  %v486_v21 = vld [vmem:[%s648_s2] ss:$0 sm:$0xff] }
   0xa   :  { %152 = vmatpush.bf16.msra.mxu0 %v467_v2  ;;  %476 = vmatpush.bf16.msra.mxu2 %v467_v2 }
   0xc   :  { %285 = vmatpush.bf16.msra.mxu1 %v472_v17  ;;  %483 = vmatpush.bf16.msra.mxu3 %v472_v17 }
   0xe   :  { %153 = vmatpush.bf16.msra.mxu0 %v466_v3  ;;  %477 = vmatpush.bf16.msra.mxu2 %v466_v3 }
  0x10   :  { %286 = vmatpush.bf16.msra.mxu1 %v471_v18  ;;  %484 = vmatpush.bf16.msra.mxu3 %v471_v18 }
  0x12   :  { %154 = vmatpush.bf16.msra.mxu0 %v465_v4  ;;  %478 = vmatpush.bf16.msra.mxu2 %v465_v4 }
  0x14   :  { %287 = vmatpush.bf16.msra.mxu1 %v470_v19  ;;  %485 = vmatpush.bf16.msra.mxu3 %v470_v19 }
  0x16   :  { %155 = vmatpush.bf16.msra.mxu0 %v464_v5  ;;  %479 = vmatpush.bf16.msra.mxu2 %v464_v5 }
  0x1a   :  { %156 = vmatpush.bf16.msra.mxu0 %v463_v6  ;;  %480 = vmatpush.bf16.msra.mxu2 %v463_v6 }
  0x1e   :  { %157 = vmatpush.bf16.msra.mxu0 %v462_v7  ;;  %481 = vmatpush.bf16.msra.mxu2 %v462_v7 }
  0x21   :  { %158 = vmatmul.bf16.vlgmr.msra.gmra.mxu0 %v454_v8  ;;  %178 = vmatmul.bf16.vlgmr.msra.gmra.mxu2 %v458_v9 }
  0x31   :  { %163 = vmatmul.bf16.gmra.mxu0 %v455_v10  ;;  %183 = vmatmul.bf16.gmra.mxu2 %v459_v11 }
  0x41   :  { %168 = vmatmul.bf16.gmra.mxu0 %v456_v12  ;;  %188 = vmatmul.bf16.gmra.mxu2 %v460_v13 }
  0x51   :  { %173 = vmatmul.bf16.gmra.mxu0 %v457_v14  ;;  %193 = vmatmul.bf16.gmra.mxu2 %v461_v15 }
  0x9e   :  { %v159_v20 = vpop.f32.mrf.mxu0 }
  0x9f   :  { %v160_v23 = vadd.f32 %v486_v21, %v159_v20 }
  0xa1   :  { %v199_v27 = vmax.f32 %v160_v23, 0.0 }
  0xa4   :  { %v179_v22 = vpop.f32.mrf.mxu2 }
  0xa5   :  { %v180_v24 = vadd.f32 %v486_v21, %v179_v22 }
  0xa6   :  { %v161_v25 = vpop.f32.mrf.mxu0 }
  0xa7   :  { %v162_v26 = vadd.f32 %v486_v21, %v161_v25  ;;  %v207_v33 = vmax.f32 %v180_v24, 0.0 }
  0xa9   :  { %v200_v28 = vmax.f32 %v162_v26, 0.0 }
  0xab   :  { %v215_v29 = vpack.c.bf16 %v200_v28, %v199_v27 }
  0xac   :  { %v181_v30 = vpop.f32.mrf.mxu2 }
  0xad   :  { %v182_v31 = vadd.f32 %v486_v21, %v181_v30  ;;  %446 = vmatmul.msk.bf16.vlgmr.msra.gmra.mxu1 %vm255_vm0, %v215_v29 }
  0xae   :  { %v164_v32 = vpop.f32.mrf.mxu0 }
  0xaf   :  { %v208_v34 = vmax.f32 %v182_v31, 0.0  ;;  %v165_v37 = vadd.f32 %v486_v21, %v164_v32 }
  0xb1   :  { %v219_v35 = vpack.c.bf16 %v208_v34, %v207_v33  ;;  %v201_v40 = vmax.f32 %v165_v37, 0.0 }
  0xb4   :  { %v184_v36 = vpop.f32.mrf.mxu2 }
  0xb5   :  { %v185_v42 = vadd.f32 %v486_v21, %v184_v36 }
  0xb6   :  { %v166_v38 = vpop.f32.mrf.mxu0 }
  0xb7   :  { %v167_v39 = vadd.f32 %v486_v21, %v166_v38  ;;  %v209_v47 = vmax.f32 %v185_v42, 0.0 }
  0xb9   :  { %v202_v41 = vmax.f32 %v167_v39, 0.0 }
  0xbb   :  { %v216_v43 = vpack.c.bf16 %v202_v41, %v201_v40 }
  0xbc   :  { %v186_v44 = vpop.f32.mrf.mxu2 }
  0xbd   :  { %v187_v45 = vadd.f32 %v486_v21, %v186_v44  ;;  %447 = vmatmul.msk.bf16.gmra.mxu1 %vm255_vm0, %v216_v43 }
  0xbe   :  { %v169_v46 = vpop.f32.mrf.mxu0 }
  0xbf   :  { %v210_v48 = vmax.f32 %v187_v45, 0.0  ;;  %v170_v51 = vadd.f32 %v486_v21, %v169_v46 }
  0xc1   :  { %v220_v49 = vpack.c.bf16 %v210_v48, %v209_v47  ;;  %v203_v54 = vmax.f32 %v170_v51, 0.0 }
  0xc3   :  { %451 = vmatmul.msk.bf16.vlgmr.msra.gmra.mxu3 %vm255_vm0, %v220_v49 }
  0xc4   :  { %v189_v50 = vpop.f32.mrf.mxu2 }
  0xc5   :  { %v190_v56 = vadd.f32 %v486_v21, %v189_v50 }
  0xc6   :  { %v171_v52 = vpop.f32.mrf.mxu0 }
  0xc7   :  { %v172_v53 = vadd.f32 %v486_v21, %v171_v52  ;;  %v211_v61 = vmax.f32 %v190_v56, 0.0 }
  0xc9   :  { %v204_v55 = vmax.f32 %v172_v53, 0.0 }
  0xcb   :  { %v217_v57 = vpack.c.bf16 %v204_v55, %v203_v54 }
  0xcc   :  { %v191_v58 = vpop.f32.mrf.mxu2 }
  0xcd   :  { %v192_v59 = vadd.f32 %v486_v21, %v191_v58  ;;  %448 = vmatmul.msk.bf16.gmra.mxu1 %vm255_vm0, %v217_v57 }
  0xce   :  { %v174_v60 = vpop.f32.mrf.mxu0 }
  0xcf   :  { %v212_v62 = vmax.f32 %v192_v59, 0.0  ;;  %v175_v1 = vadd.f32 %v486_v21, %v174_v60 }
  0xd1   :  { %v221_v63 = vpack.c.bf16 %v212_v62, %v211_v61  ;;  %v205_v4 = vmax.f32 %v175_v1, 0.0 }
  0xd3   :  { %452 = vmatmul.msk.bf16.gmra.mxu3 %vm255_vm0, %v221_v63 }
  0xd4   :  { %v194_v0 = vpop.f32.mrf.mxu2 }
  0xd5   :  { %v195_v6 = vadd.f32 %v486_v21, %v194_v0 }
  0xd6   :  { %v176_v2 = vpop.f32.mrf.mxu0 }
  0xd7   :  { %v177_v3 = vadd.f32 %v486_v21, %v176_v2  ;;  %v213_v10 = vmax.f32 %v195_v6, 0.0 }
  0xd9   :  { %v206_v5 = vmax.f32 %v177_v3, 0.0 }
  0xdb   :  { %v218_v7 = vpack.c.bf16 %v206_v5, %v205_v4 }
  0xdc   :  { %v196_v8 = vpop.f32.mrf.mxu2 }
  0xdd   :  { %v197_v9 = vadd.f32 %v486_v21, %v196_v8  ;;  %449 = vmatmul.msk.bf16.gmra.mxu1 %vm255_vm0, %v218_v7 }
  0xdf   :  { %v214_v11 = vmax.f32 %v197_v9, 0.0 }
  0xe1   :  { %v222_v12 = vpack.c.bf16 %v214_v11, %v213_v10 }
  0xe3   :  { %453 = vmatmul.msk.bf16.gmra.mxu3 %vm255_vm0, %v222_v12 }
  0xed   :  { %450 = vmatmul.msk.bf16.gmra.mxu1 %vm255_vm0, %v219_v35 }
 0x12a   :  { %v289_v13 = vpop.f32.mrf.mxu1 }
 0x12b   :  { %v329_v14 = vpack.c.bf16 %v289_v13, %v289_v13 }
 0x12d   :  { %346 = vst.msk [vmem:[%s651_s4] sm:$0xf] %vm345_vm1, %v329_v14 }
 0x132   :  { %v291_v15 = vpop.f32.mrf.mxu1 }
 0x133   :  { %v330_v16 = vpack.c.bf16 %v291_v15, %v291_v15 }
 0x135   :  { %347 = vst.msk [vmem:[%s651_s4 + $0x4] sm:$0xf] %vm345_vm1, %v330_v16 }
 0x13a   :  { %v294_v17 = vpop.f32.mrf.mxu1 }
 0x13b   :  { %v331_v18 = vpack.c.bf16 %v294_v17, %v294_v17 }
 0x13d   :  { %348 = vst.msk [vmem:[%s651_s4 + $0x8] sm:$0xf] %vm345_vm1, %v331_v18 }
 0x142   :  { %v296_v19 = vpop.f32.mrf.mxu1 }
 0x143   :  { %v332_v20 = vpack.c.bf16 %v296_v19, %v296_v19 }
 0x145   :  { %349 = vst.msk [vmem:[%s651_s4 + $0xc] sm:$0xf] %vm345_vm1, %v332_v20 }
 0x146   :  { %v314_v21 = vpop.f32.mrf.mxu3 }
 0x147   :  { %v339_v22 = vpack.c.bf16 %v314_v21, %v314_v21 }
 0x149   :  { %356 = vst.msk [vmem:[%s651_s4 + $0x28] sm:$0xf] %vm345_vm1, %v339_v22 }
 0x14a   :  { %v299_v23 = vpop.f32.mrf.mxu1 }
 0x14b   :  { %v333_v24 = vpack.c.bf16 %v299_v23, %v299_v23 }
 0x14d   :  { %350 = vst.msk [vmem:[%s651_s4 + $0x10] sm:$0xf] %vm345_vm1, %v333_v24 }
 0x14e   :  { %v316_v25 = vpop.f32.mrf.mxu3 }
 0x14f   :  { %v340_v26 = vpack.c.bf16 %v316_v25, %v316_v25 }
 0x151   :  { %357 = vst.msk [vmem:[%s651_s4 + $0x2c] sm:$0xf] %vm345_vm1, %v340_v26 }
 0x152   :  { %v301_v27 = vpop.f32.mrf.mxu1 }
 0x153   :  { %v334_v28 = vpack.c.bf16 %v301_v27, %v301_v27 }
 0x155   :  { %351 = vst.msk [vmem:[%s651_s4 + $0x14] sm:$0xf] %vm345_vm1, %v334_v28 }
 0x156   :  { %v319_v29 = vpop.f32.mrf.mxu3 }
 0x157   :  { %v341_v30 = vpack.c.bf16 %v319_v29, %v319_v29 }
 0x159   :  { %358 = vst.msk [vmem:[%s651_s4 + $0x30] sm:$0xf] %vm345_vm1, %v341_v30 }
 0x15a   :  { %v304_v31 = vpop.f32.mrf.mxu1 }
 0x15b   :  { %v335_v32 = vpack.c.bf16 %v304_v31, %v304_v31 }
 0x15d   :  { %352 = vst.msk [vmem:[%s651_s4 + $0x18] sm:$0xf] %vm345_vm1, %v335_v32 }
 0x15e   :  { %v321_v33 = vpop.f32.mrf.mxu3 }
 0x15f   :  { %v342_v34 = vpack.c.bf16 %v321_v33, %v321_v33 }
 0x161   :  { %359 = vst.msk [vmem:[%s651_s4 + $0x34] sm:$0xf] %vm345_vm1, %v342_v34 }
 0x162   :  { %v306_v35 = vpop.f32.mrf.mxu1 }
 0x163   :  { %v336_v36 = vpack.c.bf16 %v306_v35, %v306_v35 }
 0x165   :  { %353 = vst.msk [vmem:[%s651_s4 + $0x1c] sm:$0xf] %vm345_vm1, %v336_v36 }
 0x166   :  { %v324_v37 = vpop.f32.mrf.mxu3 }
 0x167   :  { %v343_v38 = vpack.c.bf16 %v324_v37, %v324_v37 }
 0x169   :  { %360 = vst.msk [vmem:[%s651_s4 + $0x38] sm:$0xf] %vm345_vm1, %v343_v38 }
 0x16a   :  { %v309_v39 = vpop.f32.mrf.mxu1 }
 0x16b   :  { %v337_v40 = vpack.c.bf16 %v309_v39, %v309_v39 }
 0x16d   :  { %354 = vst.msk [vmem:[%s651_s4 + $0x20] sm:$0xf] %vm345_vm1, %v337_v40 }
 0x16e   :  { %v326_v41 = vpop.f32.mrf.mxu3 }
 0x16f   :  { %v344_v42 = vpack.c.bf16 %v326_v41, %v326_v41 }
 0x171   :  { %361 = vst.msk [vmem:[%s651_s4 + $0x3c] sm:$0xf] %vm345_vm1, %v344_v42 }
 0x172   :  { %v311_v43 = vpop.f32.mrf.mxu1 }
 0x173   :  { %v338_v44 = vpack.c.bf16 %v311_v43, %v311_v43 }
 0x175   :  { %355 = vst.msk [vmem:[%s651_s4 + $0x24] sm:$0xf] %vm345_vm1, %v338_v44 }

// kernel: fbgcn_forward.6
= control target key start
LH: loop header
LB: loop body
LE: loop exit
PB: predicated region body
PF: predicated region fallthrough
CT: control target
= control target key end

     0   :  { %vm239_vm0 = vcmask 261120   ;;  %s619_s1 = inlined_call_operand.vmem [shape: bf16[128,32], index: 1, kind: input, shape index: {}]   ;;  %s620_s2 = inlined_call_operand.vmem [shape: f32[1,32], index: 2, kind: input, shape index: {}]   ;;  %s621_s0 = inlined_call_operand.vmem [shape: bf16[128,128], index: 0, kind: input, shape index: {}]   ;;  %s622_s3 = inlined_call_operand.vmem [shape: bf16[32,128], index: 3, kind: input, shape index: {}]   ;;  %s623_s4 = inlined_call_operand.vmem [shape: bf16[128,128], index: 4, kind: output, shape index: {}]  }
   0x1   :  { %v444_v0 = vld [vmem:[%s619_s1 + $0x38] sm:$0xff]  ;;  %v443_v1 = vld [vmem:[%s619_s1 + $0x30] sm:$0xff]  ;;  %v442_v2 = vld [vmem:[%s619_s1 + $0x28] sm:$0xff] }
   0x2   :  { %150 = vmatpush.bf16.msra.mxu0 %v444_v0  ;;  %494 = vmatpush.bf16.msra.mxu2 %v444_v0  ;;  %v441_v3 = vld [vmem:[%s619_s1 + $0x20] sm:$0xff]  ;;  %v440_v4 = vld [vmem:[%s619_s1 + $0x18] sm:$0xff]  ;;  %v439_v5 = vld [vmem:[%s619_s1 + $0x10] sm:$0xff] }
   0x3   :  { %v438_v6 = vld [vmem:[%s619_s1 + $0x8] sm:$0xff]  ;;  %v437_v7 = vld [vmem:[%s619_s1] sm:$0xff]  ;;  %v431_v12 = vld [vmem:[%s621_s0 + $0x10] sm:$0xff] }
   0x4   :  { %v429_v8 = vld [vmem:[%s621_s0] sm:$0xff]  ;;  %v430_v10 = vld [vmem:[%s621_s0 + $0x8] sm:$0xff]  ;;  %v435_v13 = vld [vmem:[%s621_s0 + $0x30] sm:$0xff] }
   0x5   :  { %v433_v9 = vld [vmem:[%s621_s0 + $0x20] sm:$0xff]  ;;  %v434_v11 = vld [vmem:[%s621_s0 + $0x28] sm:$0xff]  ;;  %v432_v14 = vld [vmem:[%s621_s0 + $0x18] sm:$0xff] }
   0x6   :  { %151 = vmatpush.bf16.msra.mxu0 %v443_v1  ;;  %495 = vmatpush.bf16.msra.mxu2 %v443_v1  ;;  %v436_v15 = vld [vmem:[%s621_s0 + $0x38] sm:$0xff]  ;;  %v446_v16 = vld [vmem:[%s622_s3 + $0x8] sm:$0xff]  ;;  %v445_v17 = vld [vmem:[%s622_s3] sm:$0xff] }
   0x7   :  { %270 = vmatpush.bf16.msra.mxu1 %v446_v16  ;;  %502 = vmatpush.bf16.msra.mxu3 %v446_v16  ;;  %v504_v19 = vld [vmem:[%s620_s2] ss:$0 sm:$0xff] }
   0xa   :  { %152 = vmatpush.bf16.msra.mxu0 %v442_v2  ;;  %496 = vmatpush.bf16.msra.mxu2 %v442_v2 }
   0xb   :  { %271 = vmatpush.bf16.msra.mxu1 %v445_v17  ;;  %503 = vmatpush.bf16.msra.mxu3 %v445_v17 }
   0xe   :  { %153 = vmatpush.bf16.msra.mxu0 %v441_v3  ;;  %497 = vmatpush.bf16.msra.mxu2 %v441_v3 }
  0x12   :  { %154 = vmatpush.bf16.msra.mxu0 %v440_v4  ;;  %498 = vmatpush.bf16.msra.mxu2 %v440_v4 }
  0x16   :  { %155 = vmatpush.bf16.msra.mxu0 %v439_v5  ;;  %499 = vmatpush.bf16.msra.mxu2 %v439_v5 }
  0x1a   :  { %156 = vmatpush.bf16.msra.mxu0 %v438_v6  ;;  %500 = vmatpush.bf16.msra.mxu2 %v438_v6 }
  0x1e   :  { %157 = vmatpush.bf16.msra.mxu0 %v437_v7  ;;  %501 = vmatpush.bf16.msra.mxu2 %v437_v7 }
  0x21   :  { %158 = vmatmul.bf16.vlgmr.msra.gmra.mxu0 %v429_v8  ;;  %178 = vmatmul.bf16.vlgmr.msra.gmra.mxu2 %v433_v9 }
  0x31   :  { %163 = vmatmul.bf16.gmra.mxu0 %v430_v10  ;;  %183 = vmatmul.bf16.gmra.mxu2 %v434_v11 }
  0x41   :  { %168 = vmatmul.bf16.gmra.mxu0 %v431_v12  ;;  %188 = vmatmul.bf16.gmra.mxu2 %v435_v13 }
  0x51   :  { %173 = vmatmul.bf16.gmra.mxu0 %v432_v14  ;;  %193 = vmatmul.bf16.gmra.mxu2 %v436_v15 }
  0x9e   :  { %v159_v18 = vpop.f32.mrf.mxu0 }
  0x9f   :  { %v160_v21 = vadd.f32 %v504_v19, %v159_v18 }
  0xa1   :  { %v199_v25 = vmax.f32 %v160_v21, 0.0 }
  0xa4   :  { %v179_v20 = vpop.f32.mrf.mxu2 }
  0xa5   :  { %v180_v22 = vadd.f32 %v504_v19, %v179_v20 }
  0xa6   :  { %v161_v23 = vpop.f32.mrf.mxu0 }
  0xa7   :  { %v162_v24 = vadd.f32 %v504_v19, %v161_v23  ;;  %v207_v31 = vmax.f32 %v180_v22, 0.0 }
  0xa9   :  { %v200_v26 = vmax.f32 %v162_v24, 0.0 }
  0xab   :  { %v215_v27 = vpack.c.bf16 %v200_v26, %v199_v25 }
  0xac   :  { %v181_v28 = vpop.f32.mrf.mxu2 }
  0xad   :  { %v182_v29 = vadd.f32 %v504_v19, %v181_v28  ;;  %421 = vmatmul.msk.bf16.vlgmr.msra.gmra.mxu1 %vm239_vm0, %v215_v27 }
  0xae   :  { %v164_v30 = vpop.f32.mrf.mxu0 }
  0xaf   :  { %v208_v32 = vmax.f32 %v182_v29, 0.0  ;;  %v165_v35 = vadd.f32 %v504_v19, %v164_v30 }
  0xb1   :  { %v219_v33 = vpack.c.bf16 %v208_v32, %v207_v31  ;;  %v201_v38 = vmax.f32 %v165_v35, 0.0 }
  0xb4   :  { %v184_v34 = vpop.f32.mrf.mxu2 }
  0xb5   :  { %v185_v40 = vadd.f32 %v504_v19, %v184_v34 }
  0xb6   :  { %v166_v36 = vpop.f32.mrf.mxu0 }
  0xb7   :  { %v167_v37 = vadd.f32 %v504_v19, %v166_v36  ;;  %v209_v45 = vmax.f32 %v185_v40, 0.0 }
  0xb9   :  { %v202_v39 = vmax.f32 %v167_v37, 0.0 }
  0xbb   :  { %v216_v41 = vpack.c.bf16 %v202_v39, %v201_v38 }
  0xbc   :  { %v186_v42 = vpop.f32.mrf.mxu2 }
  0xbd   :  { %v187_v43 = vadd.f32 %v504_v19, %v186_v42  ;;  %422 = vmatmul.msk.bf16.gmra.mxu1 %vm239_vm0, %v216_v41 }
  0xbe   :  { %v169_v44 = vpop.f32.mrf.mxu0 }
  0xbf   :  { %v210_v46 = vmax.f32 %v187_v43, 0.0  ;;  %v170_v49 = vadd.f32 %v504_v19, %v169_v44 }
  0xc1   :  { %v220_v47 = vpack.c.bf16 %v210_v46, %v209_v45  ;;  %v203_v52 = vmax.f32 %v170_v49, 0.0 }
  0xc3   :  { %426 = vmatmul.msk.bf16.vlgmr.msra.gmra.mxu3 %vm239_vm0, %v220_v47 }
  0xc4   :  { %v189_v48 = vpop.f32.mrf.mxu2 }
  0xc5   :  { %v190_v54 = vadd.f32 %v504_v19, %v189_v48 }
  0xc6   :  { %v171_v50 = vpop.f32.mrf.mxu0 }
  0xc7   :  { %v172_v51 = vadd.f32 %v504_v19, %v171_v50  ;;  %v211_v59 = vmax.f32 %v190_v54, 0.0 }
  0xc9   :  { %v204_v53 = vmax.f32 %v172_v51, 0.0 }
  0xcb   :  { %v217_v55 = vpack.c.bf16 %v204_v53, %v203_v52 }
  0xcc   :  { %v191_v56 = vpop.f32.mrf.mxu2 }
  0xcd   :  { %v192_v57 = vadd.f32 %v504_v19, %v191_v56  ;;  %423 = vmatmul.msk.bf16.gmra.mxu1 %vm239_vm0, %v217_v55 }
  0xce   :  { %v174_v58 = vpop.f32.mrf.mxu0 }
  0xcf   :  { %v212_v60 = vmax.f32 %v192_v57, 0.0  ;;  %v175_v63 = vadd.f32 %v504_v19, %v174_v58 }
  0xd1   :  { %v221_v61 = vpack.c.bf16 %v212_v60, %v211_v59  ;;  %v205_v2 = vmax.f32 %v175_v63, 0.0 }
  0xd3   :  { %427 = vmatmul.msk.bf16.gmra.mxu3 %vm239_vm0, %v221_v61 }
  0xd4   :  { %v194_v62 = vpop.f32.mrf.mxu2 }
  0xd5   :  { %v195_v4 = vadd.f32 %v504_v19, %v194_v62 }
  0xd6   :  { %v176_v0 = vpop.f32.mrf.mxu0 }
  0xd7   :  { %v177_v1 = vadd.f32 %v504_v19, %v176_v0  ;;  %v213_v8 = vmax.f32 %v195_v4, 0.0 }
  0xd9   :  { %v206_v3 = vmax.f32 %v177_v1, 0.0 }
  0xdb   :  { %v218_v5 = vpack.c.bf16 %v206_v3, %v205_v2 }
  0xdc   :  { %v196_v6 = vpop.f32.mrf.mxu2 }
  0xdd   :  { %v197_v7 = vadd.f32 %v504_v19, %v196_v6  ;;  %424 = vmatmul.msk.bf16.gmra.mxu1 %vm239_vm0, %v218_v5 }
  0xdf   :  { %v214_v9 = vmax.f32 %v197_v7, 0.0 }
  0xe1   :  { %v222_v10 = vpack.c.bf16 %v214_v9, %v213_v8 }
  0xe3   :  { %428 = vmatmul.msk.bf16.gmra.mxu3 %vm239_vm0, %v222_v10 }
  0xed   :  { %425 = vmatmul.msk.bf16.gmra.mxu1 %vm239_vm0, %v219_v33 }
 0x12a   :  { %v273_v11 = vpop.f32.mrf.mxu1 }
 0x132   :  { %v275_v12 = vpop.f32.mrf.mxu1 }
 0x133   :  { %v450_v13 = vpack.c.bf16 %v275_v12, %v273_v11 }
 0x135   :  { %451 = vst [vmem:[%s623_s4] sm:$0xff] %v450_v13  }
 0x13a   :  { %v278_v14 = vpop.f32.mrf.mxu1 }
 0x142   :  { %v280_v15 = vpop.f32.mrf.mxu1 }
 0x143   :  { %v455_v16 = vpack.c.bf16 %v280_v15, %v278_v14 }
 0x145   :  { %487 = vst [vmem:[%s623_s4 + $0x8] sm:$0xff] %v455_v16  }
 0x146   :  { %v298_v17 = vpop.f32.mrf.mxu3 }
 0x14a   :  { %v283_v18 = vpop.f32.mrf.mxu1 }
 0x14e   :  { %v300_v19 = vpop.f32.mrf.mxu3 }
 0x14f   :  { %v475_v20 = vpack.c.bf16 %v300_v19, %v298_v17 }
 0x151   :  { %491 = vst [vmem:[%s623_s4 + $0x28] sm:$0xff] %v475_v20  }
 0x152   :  { %v285_v21 = vpop.f32.mrf.mxu1 }
 0x153   :  { %v460_v22 = vpack.c.bf16 %v285_v21, %v283_v18 }
 0x155   :  { %488 = vst [vmem:[%s623_s4 + $0x10] sm:$0xff] %v460_v22  }
 0x156   :  { %v303_v23 = vpop.f32.mrf.mxu3 }
 0x15a   :  { %v288_v24 = vpop.f32.mrf.mxu1 }
 0x15e   :  { %v305_v25 = vpop.f32.mrf.mxu3 }
 0x15f   :  { %v480_v26 = vpack.c.bf16 %v305_v25, %v303_v23 }
 0x161   :  { %492 = vst [vmem:[%s623_s4 + $0x30] sm:$0xff] %v480_v26  }
 0x162   :  { %v290_v27 = vpop.f32.mrf.mxu1 }
 0x163   :  { %v465_v28 = vpack.c.bf16 %v290_v27, %v288_v24 }
 0x165   :  { %489 = vst [vmem:[%s623_s4 + $0x18] sm:$0xff] %v465_v28  }
 0x166   :  { %v308_v29 = vpop.f32.mrf.mxu3 }
 0x16a   :  { %v293_v30 = vpop.f32.mrf.mxu1 }
 0x16e   :  { %v310_v31 = vpop.f32.mrf.mxu3 }
 0x16f   :  { %v485_v32 = vpack.c.bf16 %v310_v31, %v308_v29 }
 0x171   :  { %493 = vst [vmem:[%s623_s4 + $0x38] sm:$0xff] %v485_v32  }
 0x172   :  { %v295_v33 = vpop.f32.mrf.mxu1 }
 0x173   :  { %v470_v34 = vpack.c.bf16 %v295_v33, %v293_v30 }
 0x175   :  { %490 = vst [vmem:[%s623_s4 + $0x20] sm:$0xff] %v470_v34  }

// kernel: fbgcn_forward.7
= control target key start
LH: loop header
LB: loop body
LE: loop exit
PB: predicated region body
PF: predicated region fallthrough
CT: control target
= control target key end

     0   :  { %s439_s1 = inlined_call_operand.vmem [shape: bf16[128,128], index: 1, kind: input, shape index: {}]   ;;  %s440_s2 = inlined_call_operand.vmem [shape: f32[1,128], index: 2, kind: input, shape index: {}]   ;;  %s441_s0 = inlined_call_operand.vmem [shape: bf16[128,128], index: 0, kind: input, shape index: {}]   ;;  %s442_s3 = inlined_call_operand.vmem [shape: f32[128,128], index: 3, kind: output, shape index: {}]  }
   0x1   :  { %v294_v0 = vld [vmem:[%s439_s1 + $0x38] sm:$0xff]  ;;  %v293_v1 = vld [vmem:[%s439_s1 + $0x30] sm:$0xff]  ;;  %v292_v2 = vld [vmem:[%s439_s1 + $0x28] sm:$0xff] }
   0x2   :  { %146 = vmatpush.bf16.msra.mxu0 %v294_v0  ;;  %295 = vmatpush.bf16.msra.mxu1 %v294_v0  ;;  %v291_v3 = vld [vmem:[%s439_s1 + $0x20] sm:$0xff]  ;;  %v290_v4 = vld [vmem:[%s439_s1 + $0x18] sm:$0xff]  ;;  %v289_v5 = vld [vmem:[%s439_s1 + $0x10] sm:$0xff] }
   0x3   :  { %296 = vmatpush.bf16.msra.mxu2 %v294_v0  ;;  %297 = vmatpush.bf16.msra.mxu3 %v294_v0  ;;  %v288_v6 = vld [vmem:[%s439_s1 + $0x8] sm:$0xff]  ;;  %v287_v7 = vld [vmem:[%s439_s1] sm:$0xff]  ;;  %v281_v9 = vld [vmem:[%s441_s0 + $0x10] sm:$0xff] }
   0x4   :  { %v279_v8 = vld [vmem:[%s441_s0] sm:$0xff]  ;;  %v285_v11 = vld [vmem:[%s441_s0 + $0x30] sm:$0xff]  ;;  %v280_v12 = vld [vmem:[%s441_s0 + $0x8] sm:$0xff] }
   0x5   :  { %v283_v10 = vld [vmem:[%s441_s0 + $0x20] sm:$0xff]  ;;  %v282_v13 = vld [vmem:[%s441_s0 + $0x18] sm:$0xff]  ;;  %v284_v14 = vld [vmem:[%s441_s0 + $0x28] sm:$0xff] }
   0x6   :  { %147 = vmatpush.bf16.msra.mxu0 %v293_v1  ;;  %298 = vmatpush.bf16.msra.mxu1 %v293_v1  ;;  %v286_v15 = vld [vmem:[%s441_s0 + $0x38] sm:$0xff]  ;;  %v319_v16 = vld [vmem:[%s440_s2] ss:$0 sm:$0xff] }
   0x7   :  { %299 = vmatpush.bf16.msra.mxu2 %v293_v1  ;;  %300 = vmatpush.bf16.msra.mxu3 %v293_v1 }
   0xa   :  { %148 = vmatpush.bf16.msra.mxu0 %v292_v2  ;;  %301 = vmatpush.bf16.msra.mxu1 %v292_v2 }
   0xb   :  { %302 = vmatpush.bf16.msra.mxu2 %v292_v2  ;;  %303 = vmatpush.bf16.msra.mxu3 %v292_v2 }
   0xe   :  { %149 = vmatpush.bf16.msra.mxu0 %v291_v3  ;;  %304 = vmatpush.bf16.msra.mxu1 %v291_v3 }
   0xf   :  { %305 = vmatpush.bf16.msra.mxu2 %v291_v3  ;;  %306 = vmatpush.bf16.msra.mxu3 %v291_v3 }
  0x12   :  { %150 = vmatpush.bf16.msra.mxu0 %v290_v4  ;;  %307 = vmatpush.bf16.msra.mxu1 %v290_v4 }
  0x13   :  { %308 = vmatpush.bf16.msra.mxu2 %v290_v4  ;;  %309 = vmatpush.bf16.msra.mxu3 %v290_v4 }
  0x16   :  { %151 = vmatpush.bf16.msra.mxu0 %v289_v5  ;;  %310 = vmatpush.bf16.msra.mxu1 %v289_v5 }
  0x17   :  { %311 = vmatpush.bf16.msra.mxu2 %v289_v5  ;;  %312 = vmatpush.bf16.msra.mxu3 %v289_v5 }
  0x1a   :  { %152 = vmatpush.bf16.msra.mxu0 %v288_v6  ;;  %313 = vmatpush.bf16.msra.mxu1 %v288_v6 }
  0x1b   :  { %314 = vmatpush.bf16.msra.mxu2 %v288_v6  ;;  %315 = vmatpush.bf16.msra.mxu3 %v288_v6 }
  0x1e   :  { %153 = vmatpush.bf16.msra.mxu0 %v287_v7  ;;  %316 = vmatpush.bf16.msra.mxu1 %v287_v7 }
  0x1f   :  { %317 = vmatpush.bf16.msra.mxu2 %v287_v7  ;;  %318 = vmatpush.bf16.msra.mxu3 %v287_v7 }
  0x21   :  { %154 = vmatmul.bf16.vlgmr.msra.gmra.mxu0 %v279_v8  ;;  %164 = vmatmul.bf16.vlgmr.msra.gmra.mxu1 %v281_v9 }
  0x22   :  { %174 = vmatmul.bf16.vlgmr.msra.gmra.mxu2 %v283_v10  ;;  %184 = vmatmul.bf16.vlgmr.msra.gmra.mxu3 %v285_v11 }
  0x31   :  { %159 = vmatmul.bf16.gmra.mxu0 %v280_v12  ;;  %169 = vmatmul.bf16.gmra.mxu1 %v282_v13 }
  0x32   :  { %179 = vmatmul.bf16.gmra.mxu2 %v284_v14  ;;  %189 = vmatmul.bf16.gmra.mxu3 %v286_v15 }
  0x9e   :  { %v155_v17 = vpop.f32.mrf.mxu0  ;;  %v165_v18 = vpop.f32.mrf.mxu1 }
  0x9f   :  { %v156_v19 = vadd.f32 %v319_v16, %v155_v17  ;;  %v166_v20 = vadd.f32 %v319_v16, %v165_v18 }
  0xa1   :  { %195 = vst [vmem:[%s442_s3] sm:$0xff] %v156_v19 }
  0xa2   :  { %199 = vst [vmem:[%s442_s3 + $0x20] sm:$0xff] %v166_v20 }
  0xa5   :  { %v175_v21 = vpop.f32.mrf.mxu2  ;;  %v185_v22 = vpop.f32.mrf.mxu3 }
  0xa6   :  { %v176_v23 = vadd.f32 %v319_v16, %v175_v21  ;;  %v186_v24 = vadd.f32 %v319_v16, %v185_v22  ;;  %v157_v25 = vpop.f32.mrf.mxu0  ;;  %v167_v26 = vpop.f32.mrf.mxu1 }
  0xa7   :  { %v158_v27 = vadd.f32 %v319_v16, %v157_v25  ;;  %v168_v28 = vadd.f32 %v319_v16, %v167_v26 }
  0xa8   :  { %203 = vst [vmem:[%s442_s3 + $0x40] sm:$0xff] %v176_v23 }
  0xa9   :  { %207 = vst [vmem:[%s442_s3 + $0x60] sm:$0xff] %v186_v24 }
  0xaa   :  { %196 = vst [vmem:[%s442_s3 + $0x8] sm:$0xff] %v158_v27 }
  0xab   :  { %200 = vst [vmem:[%s442_s3 + $0x28] sm:$0xff] %v168_v28 }
  0xad   :  { %v177_v29 = vpop.f32.mrf.mxu2  ;;  %v187_v30 = vpop.f32.mrf.mxu3 }
  0xae   :  { %v178_v31 = vadd.f32 %v319_v16, %v177_v29  ;;  %v188_v32 = vadd.f32 %v319_v16, %v187_v30  ;;  %v160_v33 = vpop.f32.mrf.mxu0  ;;  %v170_v34 = vpop.f32.mrf.mxu1 }
  0xaf   :  { %v161_v35 = vadd.f32 %v319_v16, %v160_v33  ;;  %v171_v36 = vadd.f32 %v319_v16, %v170_v34 }
  0xb0   :  { %204 = vst [vmem:[%s442_s3 + $0x48] sm:$0xff] %v178_v31 }
  0xb1   :  { %208 = vst [vmem:[%s442_s3 + $0x68] sm:$0xff] %v188_v32 }
  0xb2   :  { %197 = vst [vmem:[%s442_s3 + $0x10] sm:$0xff] %v161_v35 }
  0xb3   :  { %201 = vst [vmem:[%s442_s3 + $0x30] sm:$0xff] %v171_v36 }
  0xb5   :  { %v180_v37 = vpop.f32.mrf.mxu2  ;;  %v190_v38 = vpop.f32.mrf.mxu3 }
  0xb6   :  { %v181_v39 = vadd.f32 %v319_v16, %v180_v37  ;;  %v191_v40 = vadd.f32 %v319_v16, %v190_v38  ;;  %v162_v41 = vpop.f32.mrf.mxu0  ;;  %v172_v42 = vpop.f32.mrf.mxu1 }
  0xb7   :  { %v163_v43 = vadd.f32 %v319_v16, %v162_v41  ;;  %v173_v44 = vadd.f32 %v319_v16, %v172_v42 }
  0xb8   :  { %205 = vst [vmem:[%s442_s3 + $0x50] sm:$0xff] %v181_v39 }
  0xb9   :  { %209 = vst [vmem:[%s442_s3 + $0x70] sm:$0xff] %v191_v40 }
  0xba   :  { %198 = vst [vmem:[%s442_s3 + $0x18] sm:$0xff] %v163_v43 }
  0xbb   :  { %202 = vst [vmem:[%s442_s3 + $0x38] sm:$0xff] %v173_v44 }
  0xbd   :  { %v182_v45 = vpop.f32.mrf.mxu2  ;;  %v192_v46 = vpop.f32.mrf.mxu3 }
  0xbe   :  { %v183_v47 = vadd.f32 %v319_v16, %v182_v45  ;;  %v193_v48 = vadd.f32 %v319_v16, %v192_v46 }
  0xc0   :  { %206 = vst [vmem:[%s442_s3 + $0x58] sm:$0xff] %v183_v47 }
  0xc1   :  { %210 = vst [vmem:[%s442_s3 + $0x78] sm:$0xff] %v193_v48 }

</bundles_post_ra>
